<compile_context>
chip_gen: v7x
topology: tpu7x:2x2x1
jax: 0.10.0
libtpu: 0.0.40
codegen_flags: <defaults>
</compile_context>

<pallas_src>
import jax
import jax.numpy as jnp
from jax.experimental import pallas as pl
from jax.experimental.pallas import tpu as pltpu

EPS = 1e-5  # torch.nn.LayerNorm default


def _round_up(n, m):
    return ((n + m - 1) // m) * m


def _vmem_budget_bytes():
    """Generation-aware VMEM budget: ~75% of physical (≈96 MiB v5e/v6e, ≈48 MiB v7x)."""
    cap = 64 * 1024 * 1024  # safe floor if the query is unavailable
    try:
        info = pltpu.get_tpu_info()
        cap = int(getattr(info, "vmem_capacity_bytes", cap))
    except Exception:
        pass
    return (cap * 3) // 4


def prepare_params(gamma, beta, w, b):
    """One-time parameter prep (hoist out of the per-step path).

    Folds the LayerNorm affine into the Linear in f32, then casts the fused
    weight to bf16 once (MXU-native), halving the weight HBM stream.
    """
    w_f = w.astype(jnp.float32)
    w_fused = (gamma.astype(jnp.float32)[:, None] * w_f).astype(jnp.bfloat16)  # (D, H)
    b_fused = (beta.astype(jnp.float32) @ w_f + b.astype(jnp.float32)).reshape(1, -1)  # (1, H) f32
    return w_fused, b_fused


def _prenorm_kernel_fused(x_ref, w_ref, b_ref, o_ref):
    """LayerNorm (stats in f32) + full-H Linear on one (TM, D) row tile."""
    x = x_ref[...].astype(jnp.float32)
    mean = jnp.mean(x, axis=-1, keepdims=True)
    centered = x - mean
    var = jnp.mean(centered * centered, axis=-1, keepdims=True)   # biased var (torch LN)
    xhat = centered * jax.lax.rsqrt(var + EPS)
    acc = jnp.dot(xhat.astype(jnp.bfloat16), w_ref[...],
                  preferred_element_type=jnp.float32)             # MXU: bf16 x bf16 -> f32
    o_ref[...] = (acc + b_ref[...]).astype(o_ref.dtype)


def _prenorm_kernel_split(x_ref, w_ref, b_ref, o_ref, xhat_ref):
    """Rows-outer / H-inner variant: LN once per row tile, xhat cached in VMEM."""
    @pl.when(pl.program_id(1) == 0)
    def _():
        x = x_ref[...].astype(jnp.float32)
        mean = jnp.mean(x, axis=-1, keepdims=True)
        centered = x - mean
        var = jnp.mean(centered * centered, axis=-1, keepdims=True)
        xhat_ref[...] = (centered * jax.lax.rsqrt(var + EPS)).astype(jnp.bfloat16)

    acc = jnp.dot(xhat_ref[...], w_ref[...], preferred_element_type=jnp.float32)
    o_ref[...] = (acc + b_ref[...]).astype(o_ref.dtype)


def prenorm_linear(x, w_fused, b_fused):
    """x: (..., D) -> (..., H).  Equivalent to fn(LayerNorm(x)) with fn = Linear."""
    *lead, D = x.shape
    H = w_fused.shape[1]
    N = 1
    for d in lead:
        N *= d
    x2d = x.reshape(N, D)
    out_dtype = x.dtype

    x_bytes = jnp.dtype(x.dtype).itemsize
    o_bytes = jnp.dtype(out_dtype).itemsize
    sublane = max(8, 32 // min(x_bytes, o_bytes))   # 8 for f32, 16 for bf16

    budget = _vmem_budget_bytes()

    # --- row tile ----------------------------------------------------------
    row_tile = 512                                   # ~85% of HBM roofline at 512 (v6e data)
    if N > 2 * row_tile:
        # keep >= 4 row steps so v7x's two TensorCores both get work
        while row_tile > 256 and pl.cdiv(N, row_tile) < 4:
            row_tile //= 2
    if N <= row_tile:
        row_tile = max(sublane, _round_up(N, sublane))   # single step; don't over-allocate
    n_rows = pl.cdiv(N, row_tile)                        # last block masked; no pad / slice

    ln_scratch = 3 * row_tile * D * 4                    # rough f32 LN temporaries

    # --- path A: collapse H to one tile (x streamed once, LN computed once) ---
    full_bytes = (2 * row_tile * D * x_bytes             # x double buffer
                  + 2 * D * H * 2                        # fused bf16 weight
                  + 2 * row_tile * H * o_bytes           # out double buffer
                  + ln_scratch + 2 * H * 4)

    if full_bytes <= budget:
        cost = pl.CostEstimate(
            flops=2 * N * D * H, transcendentals=N,
            bytes_accessed=N * D * x_bytes + D * H * 2 + N * H * o_bytes + H * 4)
        out2d = pl.pallas_call(
            _prenorm_kernel_fused,
            out_shape=jax.ShapeDtypeStruct((N, H), out_dtype),
            grid_spec=pltpu.PrefetchScalarGridSpec(
                num_scalar_prefetch=0,
                grid=(n_rows,),
                in_specs=[
                    pl.BlockSpec((row_tile, D), lambda i: (i, 0)),   # x rows
                    pl.BlockSpec((D, H), lambda i: (0, 0)),          # fused bf16 weight
                    pl.BlockSpec((1, H), lambda i: (0, 0)),          # fused f32 bias
                ],
                out_specs=pl.BlockSpec((row_tile, H), lambda i: (i, 0)),
            ),
            compiler_params=pltpu.CompilerParams(
                dimension_semantics=("parallel",),
                vmem_limit_bytes=budget,
            ),
            cost_estimate=cost,
        )(x2d, w_fused, b_fused)
        return out2d.reshape(*lead, H)

    # --- path B: H does not fit -> rows outer ("parallel"), H inner ("arbitrary"),
    #     bf16 xhat cached in VMEM scratch across the H steps.
    fixed = 2 * row_tile * D * x_bytes + row_tile * D * 2 + ln_scratch
    per_col = 2 * D * 2 + 2 * row_tile * o_bytes          # weight + out bytes per output column
    h_budget = max(256, (budget - fixed) // per_col)
    h_tile = max(256, (h_budget // 256) * 256)
    h_tile = min(h_tile, _round_up(H, 256))
    for cand in range(h_tile, 255, -256):                 # prefer an h_tile that divides H
        if H % cand == 0:
            h_tile = cand
            break
    Hp = _round_up(H, h_tile)
    w_p, b_p = w_fused, b_fused
    if Hp != H:
        # TODO(synk): for production, pad once in prepare_params instead of per call.
        w_p = jnp.pad(w_fused, ((0, 0), (0, Hp - H)))
        b_p = jnp.pad(b_fused, ((0, 0), (0, Hp - H)))

    cost = pl.CostEstimate(
        flops=2 * N * D * Hp, transcendentals=N,
        bytes_accessed=N * D * x_bytes + D * Hp * 2 + N * Hp * o_bytes + Hp * 4)
    out2d = pl.pallas_call(
        _prenorm_kernel_split,
        out_shape=jax.ShapeDtypeStruct((N, Hp), out_dtype),
        grid_spec=pltpu.PrefetchScalarGridSpec(
            num_scalar_prefetch=0,
            grid=(n_rows, Hp // h_tile),
            in_specs=[
                pl.BlockSpec((row_tile, D), lambda i, j: (i, 0)),   # x rows (read once per i)
                pl.BlockSpec((D, h_tile), lambda i, j: (0, j)),     # weight slab streams over j
                pl.BlockSpec((1, h_tile), lambda i, j: (0, j)),     # bias slab
            ],
            out_specs=pl.BlockSpec((row_tile, h_tile), lambda i, j: (i, j)),
            scratch_shapes=[pltpu.VMEM((row_tile, D), jnp.bfloat16)],  # cached xhat
        ),
        compiler_params=pltpu.CompilerParams(
            dimension_semantics=("parallel", "arbitrary"),
            vmem_limit_bytes=budget,
        ),
        cost_estimate=cost,
    )(x2d, w_p, b_p)
    if Hp != H:
        out2d = out2d[:, :H]
    return out2d.reshape(*lead, H)


# ---------------------------------------------------------------------------
# References
# ---------------------------------------------------------------------------
def prenorm_reference_f32(x, gamma, beta, w, b):
    """Pure-f32 reference (semantic ground truth for the PyTorch module)."""
    xf = x.astype(jnp.float32)
    mean = jnp.mean(xf, axis=-1, keepdims=True)
    var = jnp.mean((xf - mean) ** 2, axis=-1, keepdims=True)
    xhat = (xf - mean) / jnp.sqrt(var + EPS)
    xhat = xhat * gamma + beta
    return (xhat @ w + b).astype(x.dtype)


def prenorm_reference_mixed(x, w_fused, b_fused):
    """Reference mirroring the kernel's folded-affine bf16-matmul / f32-acc path."""
    xf = x.astype(jnp.float32)
    mean = jnp.mean(xf, axis=-1, keepdims=True)
    var = jnp.mean((xf - mean) ** 2, axis=-1, keepdims=True)
    xhat = (xf - mean) * jax.lax.rsqrt(var + EPS)
    y = jnp.dot(xhat.astype(jnp.bfloat16), w_fused,
                preferred_element_type=jnp.float32) + b_fused.reshape(-1)
    return y.astype(x.dtype)


if __name__ == "__main__":
    B, S, D, H = 2, 8, 32, 32

    key = jax.random.PRNGKey(0)
    kx, kw, kb, kg, kbeta = jax.random.split(key, 5)

    x = jax.random.normal(kx, (B, S, D), dtype=jnp.float32)

    # LayerNorm params: non-trivial values so the affine fold is actually exercised.
    gamma = 1.0 + 0.1 * jax.random.normal(kg, (D,), dtype=jnp.float32)
    beta = 0.1 * jax.random.normal(kbeta, (D,), dtype=jnp.float32)

    # fn = Linear(D, H), deterministic synthetic weights.
    w = jax.random.normal(kw, (D, H), dtype=jnp.float32) * 0.05
    b = jax.random.normal(kb, (H,), dtype=jnp.float32) * 0.05

    # One-time parameter prep (hoisted out of the per-step path).
    w_fused, b_fused = prepare_params(gamma, beta, w, b)

    out = prenorm_linear(x, w_fused, b_fused)
    out = jax.block_until_ready(out)
    assert out.shape == (B, S, H)

    # Semantic check vs. pure-f32 reference (tolerance covers bf16 matmul inputs).
    ref_f32 = prenorm_reference_f32(x, gamma, beta, w, b)
    assert jnp.allclose(out, ref_f32, atol=2e-2, rtol=2e-2), "mismatch vs f32 reference"

    # Tight check vs. the folded-affine mixed-precision reference.
    ref_mix = prenorm_reference_mixed(x, w_fused, b_fused)
    assert jnp.allclose(out, ref_mix, atol=2e-3, rtol=2e-3), "mismatch vs mixed-precision reference"

    print("KERNEL_OK")
</pallas_src>

<mosaic_0001>
module attributes {stable_mosaic.version = 11 : i64} {
  func.func @_prenorm_kernel_fused(%arg0: i32, %arg1: memref<16x32xf32, #tpu.memory_space<vmem>>, %arg2: memref<32x32xbf16, #tpu.memory_space<vmem>>, %arg3: memref<1x32xf32, #tpu.memory_space<vmem>>, %arg4: memref<16x32xf32, #tpu.memory_space<vmem>>) attributes {dimension_semantics = [#tpu.dimension_semantics<parallel>], iteration_bounds = array<i64: 1>, scalar_prefetch = 0 : i64, scratch_operands = 0 : i64, tpu.core_type = #tpu.core_type<tc>, window_params = [{transform_indices = @transform_0, window_bounds = array<i64: 16, 32>}, {pipeline_mode = #tpu.pipeline_mode<synchronous>, transform_indices = @transform_1, window_bounds = array<i64: 32, 32>}, {pipeline_mode = #tpu.pipeline_mode<synchronous>, transform_indices = @transform_2, window_bounds = array<i64: 1, 32>}, {transform_indices = @transform_3, window_bounds = array<i64: 16, 32>}]} {
    %c0 = arith.constant 0 : index
    %c0_0 = arith.constant 0 : index
    %0 = vector.load %arg1[%c0, %c0_0] : memref<16x32xf32, #tpu.memory_space<vmem>>, vector<16x32xf32>
    %cst = arith.constant dense<0.000000e+00> : vector<16xf32>
    %1 = vector.multi_reduction <add>, %0, %cst [1] : vector<16x32xf32> to vector<16xf32>
    %2 = vector.shape_cast %1 : vector<16xf32> to vector<16x1xf32>
    %cst_1 = arith.constant 3.200000e+01 : f32
    %3 = vector.broadcast %cst_1 : f32 to vector<16x1xf32>
    %4 = arith.divf %2, %3 : vector<16x1xf32>
    %5 = vector.broadcast %4 : vector<16x1xf32> to vector<16x32xf32>
    %6 = arith.subf %0, %5 : vector<16x32xf32>
    %7 = arith.mulf %6, %6 : vector<16x32xf32>
    %cst_2 = arith.constant dense<0.000000e+00> : vector<16xf32>
    %8 = vector.multi_reduction <add>, %7, %cst_2 [1] : vector<16x32xf32> to vector<16xf32>
    %9 = vector.shape_cast %8 : vector<16xf32> to vector<16x1xf32>
    %cst_3 = arith.constant 3.200000e+01 : f32
    %10 = vector.broadcast %cst_3 : f32 to vector<16x1xf32>
    %11 = arith.divf %9, %10 : vector<16x1xf32>
    %cst_4 = arith.constant 9.99999974E-6 : f32
    %12 = vector.broadcast %cst_4 : f32 to vector<16x1xf32>
    %13 = arith.addf %11, %12 : vector<16x1xf32>
    %14 = math.rsqrt %13 : vector<16x1xf32>
    %15 = vector.broadcast %14 : vector<16x1xf32> to vector<16x32xf32>
    %16 = arith.mulf %6, %15 : vector<16x32xf32>
    %17 = arith.truncf %16 : vector<16x32xf32> to vector<16x32xbf16>
    %c0_5 = arith.constant 0 : index
    %c0_6 = arith.constant 0 : index
    %18 = vector.load %arg2[%c0_5, %c0_6] : memref<32x32xbf16, #tpu.memory_space<vmem>>, vector<32x32xbf16>
    %cst_7 = arith.constant dense<0.000000e+00> : vector<16x32xf32>
    %19 = tpu.matmul %17, %18, %cst_7 {dimension_numbers = #tpu.dot_dimension_numbers<[1], [0], [0], [1], [0, 0, 1, 1], [], []>} : vector<16x32xbf16>, vector<32x32xbf16>, vector<16x32xf32> -> vector<16x32xf32>
    %c0_8 = arith.constant 0 : index
    %c0_9 = arith.constant 0 : index
    %20 = vector.load %arg3[%c0_8, %c0_9] : memref<1x32xf32, #tpu.memory_space<vmem>>, vector<1x32xf32>
    %21 = vector.broadcast %20 : vector<1x32xf32> to vector<16x32xf32>
    %22 = arith.addf %19, %21 : vector<16x32xf32>
    %c0_10 = arith.constant 0 : index
    %c0_11 = arith.constant 0 : index
    %23 = vector.load %arg4[%c0_10, %c0_11] : memref<16x32xf32, #tpu.memory_space<vmem>>, vector<16x32xf32>
    tpu.vector_store %arg4[%c0_10, %c0_11], %22 {strides = array<i32>} : memref<16x32xf32, #tpu.memory_space<vmem>>, vector<16x32xf32>,
    return
  }
  func.func @transform_0(%arg0: i32) -> (i32, i32) {
    %c0_i32 = arith.constant 0 : i32
    %c0_i32_0 = arith.constant 0 : i32
    return %arg0, %c0_i32 : i32, i32
  }
  func.func @transform_1(%arg0: i32) -> (i32, i32) {
    %c0_i32 = arith.constant 0 : i32
    %c0_i32_0 = arith.constant 0 : i32
    %c0_i32_1 = arith.constant 0 : i32
    return %c0_i32, %c0_i32_0 : i32, i32
  }
  func.func @transform_2(%arg0: i32) -> (i32, i32) {
    %c0_i32 = arith.constant 0 : i32
    %c0_i32_0 = arith.constant 0 : i32
    %c0_i32_1 = arith.constant 0 : i32
    return %c0_i32, %c0_i32_0 : i32, i32
  }
  func.func @transform_3(%arg0: i32) -> (i32, i32) {
    %c0_i32 = arith.constant 0 : i32
    %c0_i32_0 = arith.constant 0 : i32
    return %arg0, %c0_i32 : i32, i32
  }
}

</mosaic_0001>

<bundles_post_ra>
// kernel: tpu_custom_call.1
= control target key start
LH: loop header
LB: loop body
LE: loop exit
PB: predicated region body
PF: predicated region fallthrough
CT: control target
= control target key end

     0   :  { %8 = vsyncpa [#allocation3], 0  ;;  %s345_s0 = inlined_call_operand.hbm [shape: f32[16,32], index: 0, kind: input, shape index: {}]   ;;  %s346_s1 = inlined_call_operand.hbm [shape: bf16[32,32], index: 1, kind: input, shape index: {}]   ;;  %s347_s2 = inlined_call_operand.vmem [shape: f32[1,32], index: 2, kind: input, shape index: {}]   ;;  %s348_s3 = inlined_call_operand.hbm [shape: f32[16,32], index: 3, kind: output, shape index: {}]  }
   0x1   :  { %9 = vsyncpa [#allocation6], 0 }
   0x2   :  { %10 = vsyncpa [#allocation4], 0  ;;  %s264_s12 = smov [#allocation2]   ;;  %s192_s16 = scalar_lea.hbm %s345_s0, 256 }
   0x3   :  { %s16_s13 = sshll.u32 %s264_s12, 4  ;;  %p193_p0 = scmp.ne.s32.totalorder %s345_s0, %s192_s16  ;;  %s17_s13 = int_to_ptr.vmem [resolvable:$true] %s16_s13 }
   0x4   :  { %p196_p1 = scmp.lt.u32.totalorder %s192_s16, %s345_s0 }
   0x6   :  { %p198_p2 = pnand %p196_p1, %p193_p0 }
   0x8   :  { %201 = shalt.err (!%p198_p2)
}
   0x9   :  { %s202_s21 = scalar_lea.vmem %s17_s13, 256  ;;  %p207_p4 = scmp.lt.s32.totalorder %s17_s13, %s17_s13 }
   0xa   :  { %p203_p3 = scmp.ne.s32.totalorder %s17_s13, %s202_s21  ;;  %p208_p5 = scmp.lt.s32.totalorder %s202_s21, %s202_s21 }
   0xc   :  { %p209_p6 = por %p208_p5, %p207_p4 }
   0xe   :  { %p210_p7 = pnand %p209_p6, %p203_p3 }
  0x10   :  { %213 = shalt.err (!%p210_p7)
}
  0x11   :  { %s265_s22 = smov 128   ;;  %s266_s23 = smov 8  }
  0x12   :  { %22 = dma.hbm_to_vmem [thread:$0]  %s345_s0, 256, %s17_s13, [#allocation3], %s265_s22, %s265_s22, %s266_s23  }
  0x13   :  { %s267_s26 = smov [#allocation5]   ;;  %s214_s30 = scalar_lea.hbm %s346_s1, 256 }
  0x14   :  { %s28_s27 = sshll.u32 %s267_s26, 4  ;;  %p215_p8 = scmp.ne.s32.totalorder %s346_s1, %s214_s30  ;;  %s29_s27 = int_to_ptr.vmem [resolvable:$true] %s28_s27 }
  0x15   :  { %p218_p9 = scmp.lt.u32.totalorder %s214_s30, %s346_s1 }
  0x17   :  { %p220_p10 = pnand %p218_p9, %p215_p8 }
  0x19   :  { %223 = shalt.err (!%p220_p10)
}
  0x1a   :  { %s224_s8 = scalar_lea.vmem %s29_s27, 256  ;;  %p229_p12 = scmp.lt.s32.totalorder %s29_s27, %s29_s27 }
  0x1b   :  { %p225_p11 = scmp.ne.s32.totalorder %s29_s27, %s224_s8  ;;  %p230_p13 = scmp.lt.s32.totalorder %s224_s8, %s224_s8 }
  0x1d   :  { %p231_p0 = por %p230_p13, %p229_p12 }
  0x1f   :  { %p232_p1 = pnand %p231_p0, %p225_p11 }
  0x21   :  { %235 = shalt.err (!%p232_p1)
}
  0x22   :  { %s268_s0 = smov 64   ;;  %s269_s9 = smov 4  }
  0x23   :  { %34 = dma.hbm_to_vmem [thread:$0]  %s346_s1, 256, %s29_s27, [#allocation6], %s268_s0, %s268_s0, %s269_s9  }
  0x24   :  { %258 = dma.done.wait [#allocation3], 256  }
  0x25   :  { %259 = vsyncadd [#allocation3], 4294967040 }
  0x26   :  { %260 = dma.done.wait [#allocation6], 256  }
  0x27   :  { %261 = vsyncadd [#allocation6], 4294967040  ;;  %vm46_vm0 = vcmask 261120   ;;  %v44_v0 = vld [vmem:[#allocation2] sm:$0xff]  ;;  %v45_v1 = vld [vmem:[#allocation2 + $0x8] sm:$0xff]  ;;  %v270_v15 = vmov 0.0  }
  0x28   :  { %v47_v2 = vsel %vm46_vm0, %v44_v0, 0.0  ;;  %v50_v3 = vsel %vm46_vm0, %v45_v1, 0.0  ;;  %v186_v14 = vld [vmem:[#allocation5] sm:$0xff]   ;;  %169 = vmatprep.subr.bf16.mxu0 %v270_v15  ;;  %vm271_vm1 = vmmov 0   ;;  %v187_v16 = vld [vmem:[#allocation5 + $0x8] sm:$0xff]   ;;  %s272_s13 = smov [#allocation7]  }
  0x29   :  { %48 = vadd.xlane.f32.xlu0 %v47_v2  ;;  %173 = vmatprep.mubr.msk.bf16.mxu0 %vm271_vm1, %v270_v15  ;;  %v162_v28 = vld [vmem:[%s347_s2] ss:$0 sm:$0xff]  ;;  %s149_s14 = sshll.u32 %s272_s13, 4  ;;  %s150_s14 = int_to_ptr.vmem [resolvable:$true] %s149_s14 }
  0x2a   :  { %170 = vmatpush3.bf16.msra.mxu0 %v186_v14  ;;  %s236_s15 = scalar_lea.vmem %s150_s14, 256  ;;  %p241_p3 = scmp.lt.s32.totalorder %s150_s14, %s150_s14 }
  0x2b   :  { %171 = vmatprep.subr.bf16.mxu0 %v270_v15  ;;  %p237_p2 = scmp.ne.s32.totalorder %s150_s14, %s236_s15  ;;  %p242_p4 = scmp.lt.s32.totalorder %s236_s15, %s236_s15 }
  0x2d   :  { %51 = vadd.xlane.f32.xlu0 %v50_v3  ;;  %p243_p5 = por %p242_p4, %p241_p3 }
  0x2e   :  { %172 = vmatpush3.bf16.msra.mxu0 %v187_v16 }
  0x2f   :  { %p244_p6 = pnand %p243_p5, %p237_p2 }
  0xb6   :  { %v49_v4 = vpop.xlane.xlu0 %48 }
  0xb7   :  { %v54_v5 = vmul.f32 0.03125, %v49_v4 }
  0xb9   :  { %v56_v6 = vsub.f32 %v44_v0, %v54_v5 }
  0xba   :  { %v52_v7 = vpop.xlane.xlu0 %51 }
  0xbb   :  { %v55_v8 = vmul.f32 0.03125, %v52_v7  ;;  %v58_v9 = vmul.f32 %v56_v6, %v56_v6 }
  0xbd   :  { %v57_v10 = vsub.f32 %v45_v1, %v55_v8  ;;  %v60_v11 = vsel %vm46_vm0, %v58_v9, 0.0 }
  0xbe   :  { %61 = vadd.xlane.f32.xlu1 %v60_v11 }
  0xbf   :  { %v59_v12 = vmul.f32 %v57_v10, %v57_v10 }
  0xc1   :  { %v63_v13 = vsel %vm46_vm0, %v59_v12, 0.0 }
  0xc2   :  { %64 = vadd.xlane.f32.xlu1 %v63_v13 }
 0x14b   :  { %v62_v17 = vpop.xlane.xlu1 %61 }
 0x14c   :  { %v66_v18 = vmul.f32 0.03125, %v62_v17 }
 0x14e   :  { %v68_v19 = vadd.f32 1e-05, %v66_v18 }
 0x14f   :  { %v65_v20 = vpop.xlane.xlu1 %64 }
 0x150   :  { %v67_v21 = vmul.f32 0.03125, %v65_v20  ;;  %188 = vrsqrt.f32 %v68_v19 }
 0x152   :  { %v69_v22 = vadd.f32 1e-05, %v67_v21 }
 0x154   :  { %190 = vrsqrt.f32 %v69_v22 }
 0x15a   :  { %v189_v23 = vpop.eup %188 }
 0x15b   :  { %v72_v25 = vmul.f32 %v189_v23, %v56_v6 }
 0x15e   :  { %v191_v24 = vpop.eup %190 }
 0x15f   :  { %v73_v26 = vmul.f32 %v191_v24, %v57_v10 }
 0x161   :  { %v74_v27 = vpack.c.bf16 %v73_v26, %v72_v25 }
 0x163   :  { %174 = vmatmul.mubr.msk.bf16.vlgmr.msra.gmra.mrb[0].mxu0 %vm46_vm0, %v74_v27 }
 0x236   :  { %v135_v29 = vpop.f32.mrb[0].mxu0 }
 0x237   :  { %v136_v30 = vadd.f32 %v162_v28, %v135_v29  ;;  %v175_v31 = vpop.f32.mrb[1].mxu0 }
 0x238   :  { %v138_v32 = vpop.f32.mrb[2].mxu0 }
 0x239   :  { %142 = vst.msk [vmem:[#allocation7] sm:$0xff] %vm46_vm0, %v136_v30  ;;  %v139_v33 = vadd.f32 %v162_v28, %v138_v32  ;;  %v176_v34 = vpop.f32.mrb[3].mxu0 }
 0x23b   :  { %143 = vst.msk [vmem:[#allocation7 + $0x8] sm:$0xff] %vm46_vm0, %v139_v33 }
 0x23c   :  { %247 = shalt.err (!%p244_p6)
}
 0x23d   :  { %s248_s17 = scalar_lea.hbm %s348_s3, 256 }
 0x23e   :  { %p249_p7 = scmp.ne.s32.totalorder %s348_s3, %s248_s17  ;;  %p252_p8 = scmp.lt.u32.totalorder %s248_s17, %s348_s3 }
 0x240   :  { %p254_p9 = pnand %p252_p8, %p249_p7 }
 0x242   :  { %257 = shalt.err (!%p254_p9)
}
 0x243   :  { %155 = dma.vmem_to_hbm [thread:$0]  %s150_s14, 256, %s348_s3, [#allocation4], %s265_s22, %s265_s22, %s266_s23  }
 0x244   :  { %262 = dma.done.wait [#allocation4], 256  }
 0x245   :  { %263 = vsyncadd [#allocation4], 4294967040 }
 0x246   :  { %159 = vsyncpa [#allocation3], 1 }
 0x247   :  { %160 = vsyncpa [#allocation6], 1 }
 0x248   :  { %161 = vsyncpa [#allocation4], 1 }

</bundles_post_ra>
